<compile_context>
chip_gen: v6e
topology: v6e:2x2x1
jax: 0.10.0
libtpu: 0.0.40
codegen_flags: <defaults>
</compile_context>

<pallas_src>
import functools

import jax
import jax.numpy as jnp
from jax.experimental import pallas as pl
from jax.experimental.pallas import tpu as pltpu

_MIB = 1024 * 1024


def _pos_embed_ln_kernel(x_ref, pe_ref, gamma_ref, beta_ref, o_ref, *, eps, inv_h):
    # x_ref:     (TS, H)  current (seq-tile, batch) slab (batch dim squeezed)
    # pe_ref:    (TS, H)  position-embedding rows for this seq tile
    # gamma_ref: (1, H)   LayerNorm weight (resident across grid steps)
    # beta_ref:  (1, H)   LayerNorm bias   (resident across grid steps)
    emb = x_ref[...].astype(jnp.float32) + pe_ref[...].astype(jnp.float32)  # (TS, H)

    # Two-pass moments (mean -> centered -> variance), f32 accumulation.
    mean = jnp.sum(emb, axis=-1, keepdims=True) * inv_h                      # (TS, 1)
    centered = emb - mean
    var = jnp.sum(centered * centered, axis=-1, keepdims=True) * inv_h       # (TS, 1)
    inv_std = jax.lax.rsqrt(var + eps)

    gamma = gamma_ref[...].astype(jnp.float32)                               # (1, H)
    beta = beta_ref[...].astype(jnp.float32)
    o_ref[...] = (centered * inv_std * gamma + beta).astype(o_ref.dtype)
    # TODO(synk): nn.Dropout is identity in eval/inference mode; training-mode
    # stochastic dropout (pltpu.prng_random_bits) intentionally not applied here.


def _vmem_capacity_bytes():
    """Physical VMEM per core; conservative (v7x-safe) fallback if query fails."""
    try:
        return int(pltpu.get_tpu_info().vmem_capacity_bytes)
    except Exception:
        return 64 * _MIB


def _pick_seq_tile(s_eff, hidden, bytes_x, bytes_pe, bytes_out, budget_bytes):
    """Largest seq tile (multiple of 8) within the per-generation VMEM budget."""
    if s_eff <= 8:
        return s_eff  # single block equal to the full (tiny) seq dim
    # Double-buffered x / pe / out tiles + ~3 f32 intermediates per element.
    per_row = hidden * (2 * bytes_x + 2 * bytes_pe + 2 * bytes_out + 3 * 4)
    ts = int(budget_bytes // max(per_row, 1))
    ts = max(8, min(ts, s_eff, 2048))
    return (ts // 8) * 8


def position_embedding_forward(x, pos_emb_table, gamma, beta, *, eps=1e-12):
    """x: [B, S, H]; pos_emb_table: [max_pos, H]; gamma/beta: [H].

    Returns [B, min(S, max_pos), H] (shorter than S if S > max_position_embeddings,
    matching the PyTorch module's `x[:, :max_position_embeddings, :]`).
    """
    B, S, H = x.shape
    max_pos = pos_emb_table.shape[0]
    s_eff = min(S, max_pos)

    vmem_cap = _vmem_capacity_bytes()
    small_vmem = vmem_cap <= 64 * _MIB            # v7x (64 MiB) vs v5e/v6e (128 MiB)
    budget = (20 if small_vmem else 36) * _MIB    # tile-selection budget
    limit_cap = (48 if small_vmem else 100) * _MIB

    ts = _pick_seq_tile(s_eff, H, x.dtype.itemsize, pos_emb_table.dtype.itemsize,
                        x.dtype.itemsize, budget)
    n_s = pl.cdiv(s_eff, ts)                      # last seq tile may be a partial edge block

    gamma2 = gamma.reshape(1, H)
    beta2 = beta.reshape(1, H)

    # Explicit VMEM limit sized to the chosen tiles (double-buffered) with headroom.
    pipe_bytes = 2 * ts * H * (x.dtype.itemsize + pos_emb_table.dtype.itemsize
                               + x.dtype.itemsize)
    scratch_bytes = 4 * ts * H * 4 + 4 * H * 4
    vmem_limit = int(min(limit_cap, max(2 * (pipe_bytes + scratch_bytes), 32 * _MIB)))

    kernel = functools.partial(_pos_embed_ln_kernel, eps=float(eps), inv_h=1.0 / H)

    out = pl.pallas_call(
        kernel,
        out_shape=jax.ShapeDtypeStruct((B, s_eff, H), x.dtype),
        grid_spec=pltpu.PrefetchScalarGridSpec(
            num_scalar_prefetch=0,
            # Seq-major grid: batch is the inner (fastest) axis, so the pe block
            # index (s, 0) is constant across the inner loop and each pe tile is
            # DMA'd exactly once rather than once per batch element.
            grid=(n_s, B),
            in_specs=[
                # x: batch dim squeezed; only rows of the current seq tile touched.
                pl.BlockSpec((None, ts, H), lambda s, b: (b, s, 0)),
                # pe: indexed on the seq axis only (reused across batch).
                pl.BlockSpec((ts, H), lambda s, b: (s, 0)),
                # gamma/beta: constant block index -> DMA'd once, stay resident.
                pl.BlockSpec((1, H), lambda s, b: (0, 0)),
                pl.BlockSpec((1, H), lambda s, b: (0, 0)),
            ],
            out_specs=pl.BlockSpec((None, ts, H), lambda s, b: (b, s, 0)),
        ),
        compiler_params=pltpu.CompilerParams(
            dimension_semantics=("parallel", "parallel"),
            vmem_limit_bytes=vmem_limit,
        ),
    )(x, pos_emb_table, gamma2, beta2)
    # NOTE: for H not a multiple of 128 (toy configs) stores are lane-masked;
    # realistic BERT hidden sizes (768/1024/...) are lane-dense as-is.
    return out


def reference_forward(x, pos_emb_table, gamma, beta, *, eps=1e-12):
    max_pos = pos_emb_table.shape[0]
    s_eff = min(x.shape[1], max_pos)
    emb = (x[:, :s_eff, :].astype(jnp.float32)
           + pos_emb_table[:s_eff][None].astype(jnp.float32))
    mean = jnp.mean(emb, axis=-1, keepdims=True)
    var = jnp.mean((emb - mean) ** 2, axis=-1, keepdims=True)
    normed = (emb - mean) / jnp.sqrt(var + eps)
    return (normed * gamma + beta).astype(x.dtype)


if __name__ == "__main__":
    # Small config: max_position_embeddings=16, hidden_size=32
    B, S, H = 2, 8, 32
    MAX_POS = 16
    EPS = 1e-12

    key = jax.random.PRNGKey(0)
    k_x, k_pe, k_g, k_b = jax.random.split(key, 4)

    x = jax.random.normal(k_x, (B, S, H), dtype=jnp.float32)
    pos_emb_table = 0.02 * jax.random.normal(k_pe, (MAX_POS, H), dtype=jnp.float32)
    gamma = 1.0 + 0.1 * jax.random.normal(k_g, (H,), dtype=jnp.float32)
    beta = 0.1 * jax.random.normal(k_b, (H,), dtype=jnp.float32)

    out = position_embedding_forward(x, pos_emb_table, gamma, beta, eps=EPS)
    out = jax.block_until_ready(out)

    ref = reference_forward(x, pos_emb_table, gamma, beta, eps=EPS)
    assert out.shape == (B, min(S, MAX_POS), H), out.shape
    assert jnp.allclose(out, ref, atol=1e-5, rtol=1e-5), float(jnp.max(jnp.abs(out - ref)))

    print("KERNEL_OK")
</pallas_src>

<mosaic_0001>
module attributes {stable_mosaic.version = 11 : i64} {
  func.func @_pos_embed_ln_kernel(%arg0: i32, %arg1: i32, %arg2: memref<1x8x32xf32, #tpu.memory_space<vmem>>, %arg3: memref<8x32xf32, #tpu.memory_space<vmem>>, %arg4: memref<1x32xf32, #tpu.memory_space<vmem>>, %arg5: memref<1x32xf32, #tpu.memory_space<vmem>>, %arg6: memref<1x8x32xf32, #tpu.memory_space<vmem>>) attributes {dimension_semantics = [#tpu.dimension_semantics<parallel>, #tpu.dimension_semantics<parallel>], iteration_bounds = array<i64: 1, 2>, scalar_prefetch = 0 : i64, scratch_operands = 0 : i64, tpu.core_type = #tpu.core_type<tc>, window_params = [{transform_indices = @transform_0, window_bounds = array<i64: 1, 8, 32>}, {transform_indices = @transform_1, window_bounds = array<i64: 8, 32>}, {pipeline_mode = #tpu.pipeline_mode<synchronous>, transform_indices = @transform_2, window_bounds = array<i64: 1, 32>}, {pipeline_mode = #tpu.pipeline_mode<synchronous>, transform_indices = @transform_3, window_bounds = array<i64: 1, 32>}, {transform_indices = @transform_4, window_bounds = array<i64: 1, 8, 32>}]} {
    %c0 = arith.constant 0 : index
    %c0_0 = arith.constant 0 : index
    %c0_1 = arith.constant 0 : index
    %0 = vector.load %arg2[%c0, %c0_0, %c0_1] : memref<1x8x32xf32, #tpu.memory_space<vmem>>, vector<1x8x32xf32>
    %1 = vector.shape_cast %0 : vector<1x8x32xf32> to vector<8x32xf32>
    %c0_2 = arith.constant 0 : index
    %c0_3 = arith.constant 0 : index
    %2 = vector.load %arg3[%c0_2, %c0_3] : memref<8x32xf32, #tpu.memory_space<vmem>>, vector<8x32xf32>
    %3 = arith.addf %1, %2 : vector<8x32xf32>
    %cst = arith.constant dense<0.000000e+00> : vector<8xf32>
    %4 = vector.multi_reduction <add>, %3, %cst [1] : vector<8x32xf32> to vector<8xf32>
    %5 = vector.shape_cast %4 : vector<8xf32> to vector<8x1xf32>
    %cst_4 = arith.constant 3.125000e-02 : f32
    %6 = vector.broadcast %cst_4 : f32 to vector<8x1xf32>
    %7 = arith.mulf %5, %6 : vector<8x1xf32>
    %8 = vector.broadcast %7 : vector<8x1xf32> to vector<8x32xf32>
    %9 = arith.subf %3, %8 : vector<8x32xf32>
    %10 = arith.mulf %9, %9 : vector<8x32xf32>
    %cst_5 = arith.constant dense<0.000000e+00> : vector<8xf32>
    %11 = vector.multi_reduction <add>, %10, %cst_5 [1] : vector<8x32xf32> to vector<8xf32>
    %12 = vector.shape_cast %11 : vector<8xf32> to vector<8x1xf32>
    %cst_6 = arith.constant 3.125000e-02 : f32
    %13 = vector.broadcast %cst_6 : f32 to vector<8x1xf32>
    %14 = arith.mulf %12, %13 : vector<8x1xf32>
    %cst_7 = arith.constant 9.99999996E-13 : f32
    %15 = vector.broadcast %cst_7 : f32 to vector<8x1xf32>
    %16 = arith.addf %14, %15 : vector<8x1xf32>
    %17 = math.rsqrt %16 : vector<8x1xf32>
    %c0_8 = arith.constant 0 : index
    %c0_9 = arith.constant 0 : index
    %18 = vector.load %arg4[%c0_8, %c0_9] : memref<1x32xf32, #tpu.memory_space<vmem>>, vector<1x32xf32>
    %c0_10 = arith.constant 0 : index
    %c0_11 = arith.constant 0 : index
    %19 = vector.load %arg5[%c0_10, %c0_11] : memref<1x32xf32, #tpu.memory_space<vmem>>, vector<1x32xf32>
    %20 = vector.broadcast %17 : vector<8x1xf32> to vector<8x32xf32>
    %21 = arith.mulf %9, %20 : vector<8x32xf32>
    %22 = vector.broadcast %18 : vector<1x32xf32> to vector<8x32xf32>
    %23 = arith.mulf %21, %22 : vector<8x32xf32>
    %24 = vector.broadcast %19 : vector<1x32xf32> to vector<8x32xf32>
    %25 = arith.addf %23, %24 : vector<8x32xf32>
    %c0_12 = arith.constant 0 : index
    %c0_13 = arith.constant 0 : index
    %c0_14 = arith.constant 0 : index
    %26 = vector.load %arg6[%c0_12, %c0_13, %c0_14] : memref<1x8x32xf32, #tpu.memory_space<vmem>>, vector<1x8x32xf32>
    %27 = vector.shape_cast %26 : vector<1x8x32xf32> to vector<8x32xf32>
    %28 = vector.shape_cast %25 : vector<8x32xf32> to vector<1x8x32xf32>
    tpu.vector_store %arg6[%c0_12, %c0_13, %c0_14], %28 {strides = array<i32>} : memref<1x8x32xf32, #tpu.memory_space<vmem>>, vector<1x8x32xf32>,
    return
  }
  func.func @transform_0(%arg0: i32, %arg1: i32) -> (i32, i32, i32) {
    %c0_i32 = arith.constant 0 : i32
    %c0_i32_0 = arith.constant 0 : i32
    return %arg1, %arg0, %c0_i32 : i32, i32, i32
  }
  func.func @transform_1(%arg0: i32, %arg1: i32) -> (i32, i32) {
    %c0_i32 = arith.constant 0 : i32
    %c0_i32_0 = arith.constant 0 : i32
    return %arg0, %c0_i32 : i32, i32
  }
  func.func @transform_2(%arg0: i32, %arg1: i32) -> (i32, i32) {
    %c0_i32 = arith.constant 0 : i32
    %c0_i32_0 = arith.constant 0 : i32
    %c0_i32_1 = arith.constant 0 : i32
    return %c0_i32, %c0_i32_0 : i32, i32
  }
  func.func @transform_3(%arg0: i32, %arg1: i32) -> (i32, i32) {
    %c0_i32 = arith.constant 0 : i32
    %c0_i32_0 = arith.constant 0 : i32
    %c0_i32_1 = arith.constant 0 : i32
    return %c0_i32, %c0_i32_0 : i32, i32
  }
  func.func @transform_4(%arg0: i32, %arg1: i32) -> (i32, i32, i32) {
    %c0_i32 = arith.constant 0 : i32
    %c0_i32_0 = arith.constant 0 : i32
    return %arg1, %arg0, %c0_i32 : i32, i32, i32
  }
}

</mosaic_0001>

<bundles_post_ra>
// kernel: tpu_custom_call.1
= control target key start
LH: loop header
LB: loop body
LE: loop exit
PB: predicated region body
PF: predicated region fallthrough
CT: control target
= control target key end

     0   :  { %9 = vsyncpa [#allocation3], 0  ;;  %s821_s0 = inlined_call_operand.hbm [shape: f32[2,8,32], index: 0, kind: input, shape index: {}]   ;;  %s822_s1 = inlined_call_operand.hbm [shape: f32[16,32], index: 1, kind: input, shape index: {}]   ;;  %s823_s2 = inlined_call_operand.vmem [shape: f32[1,32], index: 2, kind: input, shape index: {}]   ;;  %s824_s3 = inlined_call_operand.vmem [shape: f32[1,32], index: 3, kind: input, shape index: {}]   ;;  %s825_s4 = inlined_call_operand.hbm [shape: f32[2,8,32], index: 4, kind: output, shape index: {}]  }
   0x1   :  { %11 = vsyncpa [#allocation3 + $0x1], 0 }
   0x2   :  { %12 = vsyncpa [#allocation6], 0 }
   0x3   :  { %13 = vsyncpa [#allocation4], 0 }
   0x4   :  { %15 = vsyncpa [#allocation4 + $0x1], 0  ;;  %s651_s15 = smov 0   ;;  %s653_s16 = smov 0  }
   0x5   :  { %s655_s17 = smov 0   ;;  %s657_s18 = smov 0  }
   0x6   :  { %s659_s19 = smov 0   ;;  %s661_s20 = smov 0  }
   0x7 LB: > { %s391_s21 = sadd.s32 4294967295, %s621_s20   ;;  %s392_s22 = sadd.s32 4294967294, %s621_s20   ;;  %s621_s20 = sphi %s661_s20, %s21_s20   ;;  %s617_s19 = sphi %s659_s19, %s842_s19   ;;  %s613_s18 = sphi %s657_s18, %s841_s18   ;;  %s609_s17 = sphi %s655_s17, %s840_s17   ;;  %s605_s16 = sphi %s653_s16, %s839_s16   ;;  %s601_s15 = sphi %s651_s15, %s838_s15  }
   0x8   : > { %p55_p0 = scmp.ne.s32.totalorder %s605_s16, %s601_s15  ;;  %p685_p1 = scmp.eq.s32.totalorder %s391_s21, 0 }
   0x9   : > { %p689_p2 = scmp.eq.s32.totalorder %s391_s21, 1  ;;  %p155_p3 = scmp.eq.s32.totalorder %s392_s22, 1 }
   0xa   : > { %p695_p4 = por %p685_p1, %p55_p0  ;;  %p393_p5 = scmp.ge.s32.totalorder %s621_s20, 1 }
   0xb   : > { %p700_p6 = por %p155_p3, %p55_p0  ;;  %p162_p7 = scmp.lt.s32.totalorder %s621_s20, 3 }
   0xc   : > { %s829_s25 = scalar_select %p695_p4, 1, 0 }
   0xd   : > { %s830_s26 = scalar_select %p700_p6, 1, 0 }
   0xe   : > { %p705_p8 = pnand %p393_p5, %p162_p7  ;;  %s623_s28 = smov [#allocation5]  }
   0xf   : > { %s177_s29 = sshll.u32 %s623_s28, 4  ;;  %s30_s5 = sadd.s32 1, %s617_s19  ;;  %s178_s29 = int_to_ptr.vmem [resolvable:$true] %s177_s29 }
  0x10   : > { %p416_p10 = pneg %p705_p8  ;;  %s42_s6 = sadd.s32 1, %s609_s17 }
  0x11   : > { %p31_p12 = scmp.ge.s32.totalorder %s30_s5, 2  ;;  %s494_s7 = scalar_lea.vmem %s178_s29, 128 }
  0x12   : > { %p714_p11 = pnand %p416_p10, %p685_p1  ;;  %p495_p0 = scmp.ne.s32.totalorder %s178_s29, %s494_s7 }
  0x13   : > { %p502_p7 = scmp.lt.s32.totalorder %s178_s29, %s178_s29  ;;  %p503_p6 = scmp.lt.s32.totalorder %s494_s7, %s494_s7 }
  0x14   : > { %p485_p13 = pneg %p714_p11 }
  0x15   : > { %p504_p9 = por %p503_p6, %p502_p7 }
  0x16   : > { %p497_p3 = pnand %p495_p0, %p485_p13 }
  0x18   : > { %p498_p5 = pneg %p497_p3 }
  0x1a   : > { %p505_p4 = pnand %p504_p9, %p498_p5 }
  0x1c   : > { %508 = shalt.err (!%p505_p4)
}
  0x1d   : > { %419 = dma.hbm_to_vmem [thread:$0]  (!%p714_p11), %s822_s1, 128, %s178_s29, [#allocation6]  }
  0x1e   : > { %s844_s5 = smov (%p31_p12, %s30_s5), 0  ;;  %p49_p6 = scmp.ne.s32.totalorder %s609_s17, %s605_s16 }
  0x1f   : > { %p50_p4 = scmp.eq.s32.totalorder %s621_s20, 0  ;;  %s37_s10 = ssub.s32 %s617_s19, %s844_s5 }
  0x20   : > { %p429_p9 = scmp.lt.s32.totalorder %s621_s20, 2  ;;  %p40_p10 = scmp.eq.s32.totalorder %s37_s10, 0 }
  0x21   : > { %p51_p13 = por %p50_p4, %p49_p6  ;;  %p737_p0 = por %p689_p2, %p49_p6 }
  0x22   : > { %s194_s12 = sand.u32 1, %s609_s17   ;;  %s397_s21 = sshll.u32 %s617_s19, 7 }
  0x23   : > { %s743_s13 = scalar_select %p40_p10, %s609_s17, %s42_s6  }
  0x24   : > { %s396_s14 = sshll.u32 %s194_s12, 3  ;;  %s204_s29 = scalar_lea.hbm %s821_s0, %s397_s21 }
  0x25   : > { %s198_s30 = scalar_lea.vmem [#allocation2], %s396_s14  ;;  %p749_p11 = pnand %p429_p9, %p51_p13 }
  0x26   : > { %s206_s7 = sshll.u32 %s198_s30, 4  ;;  %s195_s24 = scalar_lea.sflag [#allocation3], %s194_s12  ;;  %s207_s7 = int_to_ptr.vmem [resolvable:$true] %s206_s7 }
  0x27   : > { %p511_p2 = pneg %p749_p11  ;;  %s522_s9 = scalar_lea.vmem %s207_s7, 128 }
  0x28   : > { %p523_p12 = scmp.ne.s32.totalorder %s207_s7, %s522_s9  ;;  %s624_s6 = smov [#allocation2]  }
  0x29   : > { %s527_s10 = sshll.u32 %s624_s6, 4  ;;  %s528_s10 = int_to_ptr.vmem [resolvable:$false] %s527_s10 }
  0x2a   : > { %p525_p3 = pnand %p523_p12, %p511_p2  ;;  %s529_s22 = scalar_lea.vmem %s528_s10, 256 }
  0x2b   : > { %p530_p7 = scmp.lt.s32.totalorder %s207_s7, %s528_s10  ;;  %p531_p6 = scmp.lt.s32.totalorder %s529_s22, %s522_s9 }
  0x2c   : > { %p526_p5 = pneg %p525_p3 }
  0x2d   : > { %p532_p4 = por %p531_p6, %p530_p7 }
  0x2f   : > { %p533_p10 = pnand %p532_p4, %p526_p5 }
  0x31   : > { %536 = shalt.err (!%p533_p10)
}
  0x32   : > { %423 = dma.hbm_to_vmem [thread:$0]  (!%p749_p11), %s204_s29, 128, %s207_s7, %s195_s24  }
  0x33   : > { %215 = sbr.rel (%p705_p8) target bundleno = 383 (0x17f), region = 36  ;;  %s760_s12 = sand.u32 (!%p705_p8), 1, %s605_s16  }
  0x34   : > { %s399_s14 = sshll.u32 (!%p705_p8), %s760_s12, 3  ;;  %s218_s21 = scalar_lea.sflag (!%p705_p8), [#allocation3], %s760_s12 }
  0x35   : > { %s221_s28 = scalar_lea.vmem (!%p705_p8), [#allocation2], %s399_s14  ;;  %p835_p9 = scmp.ne.s32.totalorder (!%p705_p8), %s829_s25, 0 }
  0x38   : > { %588 = dma.done.wait (%p835_p9), %s218_s21, 128  }
  0x39   : > { %590 = vsyncadd (%p835_p9), %s218_s21, 4294967168 }
  0x3a   : > { %592 = dma.done.wait (%p685_p1), [#allocation6], 128  }
  0x3b   : > { %594 = vsyncadd (%p685_p1), [#allocation6], 4294967168  ;;  %v250_v0 = vld [vmem:[%s221_s28] sm:$0xff]  ;;  %v251_v1 = vld [vmem:[#allocation5] sm:$0xff]  ;;  %vm253_vm0 = vcmask 261120   ;;  %s405_s30 = sshll.u32 %s613_s18, 7 }
  0x3c   : > { %v252_v2 = vadd.f32 %v251_v1, %v250_v0  ;;  %v402_v13 = vld [vmem:[%s823_s2] ss:$0 sm:$0xff]  ;;  %s249_s7 = scalar_lea.vmem [#allocation7], %s399_s14  ;;  %s297_s6 = scalar_lea.hbm %s825_s4, %s405_s30 }
  0x3d   : > { %v403_v15 = vld [vmem:[%s824_s3] ss:$0 sm:$0xff]  ;;  %s299_s8 = sshll.u32 %s249_s7, 4  ;;  %s285_s10 = scalar_lea.sflag [#allocation4], %s760_s12  ;;  %s300_s8 = int_to_ptr.vmem [resolvable:$true] %s299_s8 }
  0x3e   : > { %v254_v3 = vsel %vm253_vm0, %v252_v2, 0.0  ;;  %s537_s22 = scalar_lea.vmem %s300_s8, 128  ;;  %s625_s21 = smov [#allocation7]  }
  0x3f   : > { %255 = vadd.xlane.f32.xlu0 %v254_v3  ;;  %p538_p1 = scmp.ne.s32.totalorder %s300_s8, %s537_s22  ;;  %s541_s28 = sshll.u32 %s625_s21, 4  ;;  %s542_s28 = int_to_ptr.vmem [resolvable:$false] %s541_s28 }
  0x40   : > { %s543_s18 = scalar_lea.vmem %s542_s28, 256  ;;  %p544_p11 = scmp.lt.s32.totalorder %s300_s8, %s542_s28 }
  0x41   : > { %p539_p8 = pnand %p538_p1, %p737_p0  ;;  %p545_p2 = scmp.lt.s32.totalorder %s543_s18, %s537_s22 }
  0x43   : > { %p540_p13 = pneg %p539_p8  ;;  %p546_p12 = por %p545_p2, %p544_p11 }
  0x45   : > { %p547_p3 = pnand %p546_p12, %p540_p13 }
  0xc8   : > { %v256_v4 = vpop.xlane.xlu0 %255 }
  0xc9   : > { %v257_v5 = vmul.f32 0.03125, %v256_v4 }
  0xcb   : > { %v258_v6 = vsub.f32 %v252_v2, %v257_v5 }
  0xcd   : > { %v259_v7 = vmul.f32 %v258_v6, %v258_v6 }
  0xcf   : > { %v260_v8 = vsel %vm253_vm0, %v259_v7, 0.0 }
  0xd0   : > { %261 = vadd.xlane.f32.xlu0 %v260_v8 }
 0x159   : > { %v262_v9 = vpop.xlane.xlu0 %261 }
 0x15a   : > { %v263_v10 = vmul.f32 0.03125, %v262_v9 }
 0x15c   : > { %v264_v11 = vadd.f32 1e-12, %v263_v10 }
 0x15e   : > { %481 = vrsqrt.f32 %v264_v11 }
 0x16b   : > { %v482_v12 = vpop.eup %481 }
 0x16c   : > { %v268_v14 = vmul.f32 %v482_v12, %v258_v6 }
 0x16e   : > { %v275_v16 = vmul.f32 %v402_v13, %v268_v14 }
 0x170   : > { %v282_v17 = vadd.f32 %v403_v15, %v275_v16 }
 0x172   : > { %283 = vst.msk [vmem:[%s249_s7] sm:$0xff] %vm253_vm0, %v282_v17 }
 0x173   : > { %550 = shalt.err (!%p547_p3)
}
 0x174   : > { %s551_s14 = scalar_lea.hbm %s297_s6, 128  ;;  %s555_s25 = scalar_lea.hbm %s825_s4, 256 }
 0x175   : > { %p552_p5 = scmp.ne.s32.totalorder %s297_s6, %s551_s14  ;;  %p556_p4 = scmp.lt.s32.totalorder %s297_s6, %s825_s4 }
 0x176   : > { %p557_p10 = scmp.lt.s32.totalorder %s555_s25, %s551_s14 }
 0x177   : > { %p553_p7 = pnand %p552_p5, %p737_p0 }
 0x178   : > { %p558_p9 = por %p557_p10, %p556_p4 }
 0x179   : > { %p554_p6 = pneg %p553_p7 }
 0x17b   : > { %p559_p1 = pnand %p558_p9, %p554_p6 }
 0x17d   : > { %562 = shalt.err (!%p559_p1)
}
 0x17e   : > { %414 = dma.vmem_to_hbm [thread:$0]  (%p737_p0), %s300_s8, 128, %s297_s6, %s285_s10  }
 0x17f PF: > { %s311_s30 = sand.u32 1, %s601_s15   ;;  %p836_p8 = scmp.ne.s32.totalorder %s830_s26, 0 }
 0x180   : > { %p837_p13 = scmp.ge.s32.totalorder %s621_s20, 2  ;;  %s312_s7 = scalar_lea.sflag [#allocation4], %s311_s30 }
 0x182   : > { %p425_p11 = pnand %p837_p13, %p836_p8 }
 0x184   : > { %p426_p2 = pneg %p425_p11 }
 0x186   : > { %596 = dma.done.wait (%p426_p2), %s312_s7, 128  }
 0x187   : > { %598 = vsyncadd (%p426_p2), %s312_s7, 4294967168  ;;  %s21_s20 = sadd.s32 1, %s621_s20   ;;  %s838_s15 = smov %s605_s16 }
 0x188   : > { %p18_p12 = scmp.ge.s32.totalorder %s21_s20, 4   ;;  %s839_s16 = smov %s609_s17 }
 0x189   : > { %s840_s17 = smov %s743_s13  ;;  %s841_s18 = smov %s617_s19 }
 0x18a   : > { %s842_s19 = smov %s844_s5  ;;  %20 = sbr.rel (!%p18_p12) target bundleno = 7 (0x7), region = 86 }
 0x18f   :  { %317 = vsyncpa [#allocation3], 1 }
 0x190   :  { %319 = vsyncpa [#allocation3 + $0x1], 1 }
 0x191   :  { %320 = vsyncpa [#allocation6], 1 }
 0x192   :  { %321 = vsyncpa [#allocation4], 1 }
 0x193   :  { %323 = vsyncpa [#allocation4 + $0x1], 1 }

</bundles_post_ra>
